<compile_context>
chip_gen: v7x
topology: tpu7x:2x2x1
jax: 0.10.0
libtpu: 0.0.40
codegen_flags: <defaults>
</compile_context>

<pallas_src>
import jax
import jax.numpy as jnp
from jax.experimental import pallas as pl
from jax.experimental.pallas import tpu as pltpu  # noqa: F401  (TPU backend)


def _copy_kernel(x_ref, o_ref):
    # Pure data movement: identity copy of the whole 2-D slab through VMEM.
    o_ref[...] = x_ref[...]


def _infer_view_shape(total_elems, view_shape):
    """Resolve a single -1 in `view_shape` against `total_elems` (static Python)."""
    known = 1
    infer_idx = None
    for i, d in enumerate(view_shape):
        if d == -1:
            infer_idx = i
        else:
            known *= d
    if infer_idx is None:
        assert known == total_elems
        return tuple(view_shape)
    assert total_elems % known == 0, (total_elems, view_shape)
    out = list(view_shape)
    out[infer_idx] = total_elems // known
    return tuple(out)


@jax.jit
def view_expand_inferred_dim(a):
    """Equivalent of torch `a.view(2, -1, 2)` (a is contiguous, e.g. (2, 6) -> (2, 3, 2))."""
    out_shape_3d = _infer_view_shape(a.size, (2, -1, 2))

    nbytes = a.size * a.dtype.itemsize
    out2d = pl.pallas_call(
        _copy_kernel,
        out_shape=jax.ShapeDtypeStruct(a.shape, a.dtype),
        cost_estimate=pl.CostEstimate(
            flops=0, transcendentals=0, bytes_accessed=2 * nbytes
        ),
    )(a)

    # Metadata-only reshape (under jit) to the inferred view shape.
    return out2d.reshape(out_shape_3d)


if __name__ == "__main__":
    key = jax.random.PRNGKey(0)
    a = jax.random.normal(key, (2, 6), dtype=jnp.float32)

    out = view_expand_inferred_dim(a)
    jax.block_until_ready(out)

    # Correctness check against the pure-JAX reference of torch .view(2, -1, 2).
    ref = a.reshape(2, 3, 2)
    assert out.shape == (2, 3, 2), out.shape
    assert out.dtype == jnp.float32, out.dtype
    assert bool(jnp.array_equal(out, ref))

    print("KERNEL_OK")
</pallas_src>

<mosaic_0001>
module attributes {stable_mosaic.version = 11 : i64} {
  func.func @_copy_kernel(%arg0: memref<2x6xf32, #tpu.memory_space<vmem>>, %arg1: memref<2x6xf32, #tpu.memory_space<vmem>>) attributes {dimension_semantics = [], scalar_prefetch = 0 : i64, scratch_operands = 0 : i64, tpu.core_type = #tpu.core_type<tc>} {
    %c0 = arith.constant 0 : index
    %c0_0 = arith.constant 0 : index
    %0 = vector.load %arg0[%c0, %c0_0] : memref<2x6xf32, #tpu.memory_space<vmem>>, vector<2x6xf32>
    %c0_1 = arith.constant 0 : index
    %c0_2 = arith.constant 0 : index
    %1 = vector.load %arg1[%c0_1, %c0_2] : memref<2x6xf32, #tpu.memory_space<vmem>>, vector<2x6xf32>
    tpu.vector_store %arg1[%c0_1, %c0_2], %0 {strides = array<i32>} : memref<2x6xf32, #tpu.memory_space<vmem>>, vector<2x6xf32>,
    return
  }
}

</mosaic_0001>

<bundles_post_ra>
// kernel: view_expand_inferred_dim.1
= control target key start
LH: loop header
LB: loop body
LE: loop exit
PB: predicated region body
PF: predicated region fallthrough
CT: control target
= control target key end

     0   :  { %6 = vsyncpa [#allocation3], 0  ;;  %s53_s6 = smov [#allocation2]   ;;  %s79_s0 = inlined_call_operand.hbm [shape: f32[2,6], index: 0, kind: input, shape index: {}]   ;;  %s80_s1 = inlined_call_operand.vmem [shape: f32[2,6], index: 1, kind: output, shape index: {}]  }
   0x1   :  { %s13_s7 = sshll.u32 %s53_s6, 4  ;;  %s29_s10 = scalar_lea.hbm %s79_s0, 32  ;;  %s14_s7 = int_to_ptr.vmem [resolvable:$true] %s13_s7 }
   0x2   :  { %p30_p0 = scmp.ne.s32.totalorder %s79_s0, %s29_s10  ;;  %p33_p1 = scmp.lt.u32.totalorder %s29_s10, %s79_s0 }
   0x4   :  { %p35_p2 = pnand %p33_p1, %p30_p0 }
   0x6   :  { %38 = shalt.err (!%p35_p2)
}
   0x7   :  { %s39_s15 = scalar_lea.vmem %s14_s7, 32  ;;  %p44_p4 = scmp.lt.s32.totalorder %s14_s7, %s14_s7 }
   0x8   :  { %p40_p3 = scmp.ne.s32.totalorder %s14_s7, %s39_s15  ;;  %p45_p5 = scmp.lt.s32.totalorder %s39_s15, %s39_s15 }
   0xa   :  { %p46_p6 = por %p45_p5, %p44_p4 }
   0xc   :  { %p47_p7 = pnand %p46_p6, %p40_p3 }
   0xe   :  { %50 = shalt.err (!%p47_p7)
}
   0xf   :  { %16 = dma.hbm_to_vmem [thread:$0]  %s79_s0, 32, %s14_s7, [#allocation3]  }
  0x10   :  { %51 = dma.done.wait [#allocation3], 32  }
  0x11   :  { %52 = vsyncadd [#allocation3], 4294967264  ;;  %vm21_vm0 = vcmask 41984   ;;  %v20_v0 = vld [vmem:[#allocation2] sm:$0x3] }
  0x12   :  { %22 = vst.msk [vmem:[%s80_s1] sm:$0x3] %vm21_vm0, %v20_v0 }
  0x13   :  { %27 = vsyncpa [#allocation3], 1 }

</bundles_post_ra>
